<compile_context>
chip_gen: v6e
topology: v6e:2x2x1
jax: 0.10.0
libtpu: 0.0.40
codegen_flags: <defaults>
</compile_context>

<pallas_src>
import math

import jax
import jax.numpy as jnp
from jax.experimental import pallas as pl
from jax.experimental.pallas import tpu as pltpu


# ----------------------------------------------------------------------------
# Fused GRCU recurrence kernel: one grid step == one timestep.
# ----------------------------------------------------------------------------
def _grcu_kernel(z_ref, a_ref, x_ref,
                 w_ref, uur_ref, uh_ref, b_ref, q0_ref,
                 out_ref, q_scr):
    """Per timestep: evolve Q with the mat-GRU, then emit relu(Ahat @ X @ Q).

    Q is carried across timesteps in a VMEM scratch; gate weights use constant
    index_maps so they stay VMEM-resident for the whole sequence.
    """
    f32 = jnp.float32
    F = q0_ref.shape[0]

    @pl.when(pl.program_id(0) == 0)
    def _init():
        q_scr[...] = q0_ref[...]

    q = q_scr[...]
    z = z_ref[...]

    # Stacked gate matmuls (3 MXU calls instead of 6 tiny ones):
    #   wz = [Wu;Wr;Wh] @ z + [Bu;Br;Bh]      -> (3F, k)
    #   uq = [Uu;Ur]   @ q                    -> (2F, k)
    wz = jnp.dot(w_ref[...], z, preferred_element_type=f32) + b_ref[...]
    uq = jnp.dot(uur_ref[...], q, preferred_element_type=f32)

    update = jax.nn.sigmoid(wz[0:F] + uq[0:F])
    reset = jax.nn.sigmoid(wz[F:2 * F] + uq[F:2 * F])
    h_cap = jnp.tanh(
        wz[2 * F:3 * F]
        + jnp.dot(uh_ref[...], reset * q, preferred_element_type=f32))

    q_new = (1.0 - update) * q + update * h_cap
    q_scr[...] = q_new

    # Fused GCN propagation with ReLU activation.
    xw = jnp.dot(x_ref[...], q_new, preferred_element_type=f32)
    out_ref[...] = jnp.maximum(
        jnp.dot(a_ref[...], xw, preferred_element_type=f32), 0.0)


def grcu_layer(A_stack, X_stack, Z_stack, params):
    """Run one GRCU layer over all T timesteps with a single pallas_call."""
    T, N, _ = A_stack.shape
    F_in, F_out = params["W0"].shape
    k = F_out

    # Stack gate weights / biases along the sublane axis (tiny, done once per call).
    w_stack = jnp.concatenate([params["Wu"], params["Wr"], params["Wh"]], axis=0)
    u_ur = jnp.concatenate([params["Uu"], params["Ur"]], axis=0)
    b_stack = jnp.concatenate([params["Bu"], params["Br"], params["Bh"]], axis=0)

    const2 = lambda t: (0, 0)

    flops_per_t = 2 * k * (6 * F_in * F_in + N * F_in + N * N)
    cost = pl.CostEstimate(
        flops=int(T * flops_per_t),
        transcendentals=int(T * 3 * F_in * k),
        bytes_accessed=int(4 * (Z_stack.size + A_stack.size + X_stack.size
                                + w_stack.size + u_ur.size + b_stack.size
                                + params["Uh"].size + params["W0"].size
                                + T * N * F_out)),
    )

    return pl.pallas_call(
        _grcu_kernel,
        out_shape=jax.ShapeDtypeStruct((T, N, F_out), jnp.float32),
        grid=(T,),
        in_specs=[
            pl.BlockSpec((None, F_in, k), lambda t: (t, 0, 0)),    # z_topk_t
            pl.BlockSpec((None, N, N), lambda t: (t, 0, 0)),       # Ahat_t
            pl.BlockSpec((None, N, F_in), lambda t: (t, 0, 0)),    # X_t
            pl.BlockSpec((3 * F_in, F_in), const2),                # [Wu;Wr;Wh]
            pl.BlockSpec((2 * F_in, F_in), const2),                # [Uu;Ur]
            pl.BlockSpec((F_in, F_in), const2),                    # Uh
            pl.BlockSpec((3 * F_in, k), const2),                   # [Bu;Br;Bh]
            pl.BlockSpec((F_in, k), const2),                       # Q0
        ],
        out_specs=pl.BlockSpec((None, N, F_out), lambda t: (t, 0, 0)),
        scratch_shapes=[pltpu.VMEM((F_in, k), jnp.float32)],       # evolving Q
        compiler_params=pltpu.CompilerParams(
            dimension_semantics=("arbitrary",)),                   # sequential in t
        cost_estimate=cost,
    )(Z_stack, A_stack, X_stack, w_stack, u_ur, params["Uh"], b_stack,
      params["W0"])


# ----------------------------------------------------------------------------
# JAX glue: batched TopK node selection for all timesteps (hoisted out of the
# recurrence -- it depends only on X_t, mask_t and the scorer, not on Q).
# ----------------------------------------------------------------------------
def choose_topk_all(X_stack, mask_stack, scorer, k):
    # scores_t = X_t @ scorer / ||scorer|| + mask_t        (T, N, 1)
    inv_norm = 1.0 / jnp.linalg.norm(scorer)
    scores = jnp.einsum("tnf,fo->tno", X_stack, scorer) * inv_norm + mask_stack
    vals, idx = jax.lax.top_k(scores[..., 0], k)            # (T, k) each
    gathered = jax.vmap(lambda x, i: x[i])(X_stack, idx)    # (T, k, F)
    out = gathered * jnp.tanh(vals)[:, :, None]             # (T, k, F)
    # TODO(synk): the "-inf filtering + pad_with_last_val" branch of the
    # PyTorch TopK is not replicated (finite masks and k <= N keep every
    # selected index valid).
    return jnp.swapaxes(out, 1, 2)                          # (T, F, k)


# ----------------------------------------------------------------------------
# EGCN forward
# ----------------------------------------------------------------------------
def egcn_forward(params, A_stack, X_stack, mask_stack, skipfeats=False):
    node_feats = X_stack[-1]
    embs = X_stack
    for layer_params in params:
        k = layer_params["W0"].shape[1]
        Z = choose_topk_all(embs, mask_stack, layer_params["scorer"], k)
        embs = grcu_layer(A_stack, embs, Z, layer_params)   # one fused kernel/layer
    out = embs[-1]
    if skipfeats:
        out = jnp.concatenate([out, node_feats], axis=1)
    return out


egcn_forward_jit = jax.jit(egcn_forward, static_argnames=("skipfeats",))


# ----------------------------------------------------------------------------
# Deterministic parameter construction (xavier_uniform like the PyTorch init)
# ----------------------------------------------------------------------------
def _xavier(key, shape):
    bound = math.sqrt(6.0 / (shape[0] + shape[1]))
    return jax.random.uniform(key, shape, jnp.float32, -bound, bound)


def init_layer_params(key, in_f, out_f):
    keys = jax.random.split(key, 8)
    p = {
        "W0": _xavier(keys[0], (in_f, out_f)),       # initial GCN weight 'w'
        "scorer": _xavier(keys[1], (in_f, 1)),       # TopK scorer
    }
    for i, g in enumerate(["u", "r", "h"]):
        p["W" + g] = _xavier(keys[2 + 2 * i], (in_f, in_f))
        p["U" + g] = _xavier(keys[3 + 2 * i], (in_f, in_f))
        p["B" + g] = jnp.zeros((in_f, out_f), jnp.float32)
    return p


# ----------------------------------------------------------------------------
if __name__ == "__main__":
    key = jax.random.PRNGKey(0)
    N = 16                 # nodes
    T = 3                  # timesteps
    feats = [8, 16, 16]    # [feats_per_node, layer_1_feats, layer_2_feats]

    k_params, k_data = jax.random.split(key)
    layer_keys = jax.random.split(k_params, len(feats) - 1)
    params = [init_layer_params(layer_keys[i], feats[i], feats[i + 1])
              for i in range(len(feats) - 1)]

    data_keys = jax.random.split(k_data, 2 * T)
    A_list, X_list = [], []
    for t in range(T):
        a = jax.random.uniform(data_keys[2 * t], (N, N), jnp.float32)
        A_list.append(a / a.sum(axis=1, keepdims=True))            # "Ahat"
        X_list.append(
            jax.random.normal(data_keys[2 * t + 1], (N, feats[0]), jnp.float32))

    A_stack = jnp.stack(A_list)                        # (T, N, N)
    X_stack = jnp.stack(X_list)                        # (T, N, F0)
    mask_stack = jnp.zeros((T, N, 1), jnp.float32)     # all nodes valid

    out = egcn_forward_jit(params, A_stack, X_stack, mask_stack, skipfeats=False)
    jax.block_until_ready(out)
    assert out.shape == (N, feats[-1]) and out.dtype == jnp.float32
    assert bool(jnp.all(jnp.isfinite(out)))
    print("KERNEL_OK")
</pallas_src>

<mosaic_0001>
module attributes {stable_mosaic.version = 11 : i64} {
  func.func @_grcu_kernel(%arg0: i32, %arg1: memref<1x16x16xf32, #tpu.memory_space<vmem>>, %arg2: memref<1x16x16xf32, #tpu.memory_space<vmem>>, %arg3: memref<1x16x16xf32, #tpu.memory_space<vmem>>, %arg4: memref<48x16xf32, #tpu.memory_space<vmem>>, %arg5: memref<32x16xf32, #tpu.memory_space<vmem>>, %arg6: memref<16x16xf32, #tpu.memory_space<vmem>>, %arg7: memref<48x16xf32, #tpu.memory_space<vmem>>, %arg8: memref<16x16xf32, #tpu.memory_space<vmem>>, %arg9: memref<1x16x16xf32, #tpu.memory_space<vmem>>, %arg10: memref<16x16xf32, #tpu.memory_space<vmem>>) attributes {dimension_semantics = [#tpu.dimension_semantics<arbitrary>], iteration_bounds = array<i64: 3>, scalar_prefetch = 0 : i64, scratch_operands = 1 : i64, tpu.core_type = #tpu.core_type<tc>, window_params = [{transform_indices = @transform_0, window_bounds = array<i64: 1, 16, 16>}, {transform_indices = @transform_1, window_bounds = array<i64: 1, 16, 16>}, {transform_indices = @transform_2, window_bounds = array<i64: 1, 16, 16>}, {pipeline_mode = #tpu.pipeline_mode<synchronous>, transform_indices = @transform_3, window_bounds = array<i64: 48, 16>}, {pipeline_mode = #tpu.pipeline_mode<synchronous>, transform_indices = @transform_4, window_bounds = array<i64: 32, 16>}, {pipeline_mode = #tpu.pipeline_mode<synchronous>, transform_indices = @transform_5, window_bounds = array<i64: 16, 16>}, {pipeline_mode = #tpu.pipeline_mode<synchronous>, transform_indices = @transform_6, window_bounds = array<i64: 48, 16>}, {pipeline_mode = #tpu.pipeline_mode<synchronous>, transform_indices = @transform_7, window_bounds = array<i64: 16, 16>}, {transform_indices = @transform_8, window_bounds = array<i64: 1, 16, 16>}]} {
    %c0_i32 = arith.constant 0 : i32
    %0 = arith.cmpi eq, %arg0, %c0_i32 : i32
    %1 = arith.extui %0 : i1 to i32
    %c0_i32_0 = arith.constant 0 : i32
    %2 = arith.cmpi ne, %1, %c0_i32_0 : i32
    scf.if %2 {
      %c0_32 = arith.constant 0 : index
      %c0_33 = arith.constant 0 : index
      %51 = vector.load %arg8[%c0_32, %c0_33] : memref<16x16xf32, #tpu.memory_space<vmem>>, vector<16x16xf32>
      %c0_34 = arith.constant 0 : index
      %c0_35 = arith.constant 0 : index
      %52 = vector.load %arg10[%c0_34, %c0_35] : memref<16x16xf32, #tpu.memory_space<vmem>>, vector<16x16xf32>
      tpu.vector_store %arg10[%c0_34, %c0_35], %51 {strides = array<i32>} : memref<16x16xf32, #tpu.memory_space<vmem>>, vector<16x16xf32>,
    } else {
    }
    %c0 = arith.constant 0 : index
    %c0_1 = arith.constant 0 : index
    %3 = vector.load %arg10[%c0, %c0_1] : memref<16x16xf32, #tpu.memory_space<vmem>>, vector<16x16xf32>
    %c0_2 = arith.constant 0 : index
    %c0_3 = arith.constant 0 : index
    %c0_4 = arith.constant 0 : index
    %4 = vector.load %arg1[%c0_2, %c0_3, %c0_4] : memref<1x16x16xf32, #tpu.memory_space<vmem>>, vector<1x16x16xf32>
    %5 = vector.shape_cast %4 : vector<1x16x16xf32> to vector<16x16xf32>
    %c0_5 = arith.constant 0 : index
    %c0_6 = arith.constant 0 : index
    %6 = vector.load %arg4[%c0_5, %c0_6] : memref<48x16xf32, #tpu.memory_space<vmem>>, vector<48x16xf32>
    %cst = arith.constant dense<0.000000e+00> : vector<48x16xf32>
    %7 = tpu.matmul %6, %5, %cst {dimension_numbers = #tpu.dot_dimension_numbers<[1], [0], [0], [1], [0, 0, 1, 1], [], []>} : vector<48x16xf32>, vector<16x16xf32>, vector<48x16xf32> -> vector<48x16xf32>
    %c0_7 = arith.constant 0 : index
    %c0_8 = arith.constant 0 : index
    %8 = vector.load %arg7[%c0_7, %c0_8] : memref<48x16xf32, #tpu.memory_space<vmem>>, vector<48x16xf32>
    %9 = arith.addf %7, %8 : vector<48x16xf32>
    %c0_9 = arith.constant 0 : index
    %c0_10 = arith.constant 0 : index
    %10 = vector.load %arg5[%c0_9, %c0_10] : memref<32x16xf32, #tpu.memory_space<vmem>>, vector<32x16xf32>
    %cst_11 = arith.constant dense<0.000000e+00> : vector<32x16xf32>
    %11 = tpu.matmul %10, %3, %cst_11 {dimension_numbers = #tpu.dot_dimension_numbers<[1], [0], [0], [1], [0, 0, 1, 1], [], []>} : vector<32x16xf32>, vector<16x16xf32>, vector<32x16xf32> -> vector<32x16xf32>
    %12 = vector.extract_strided_slice %9 {offsets = [0, 0], sizes = [16, 16], strides = [1, 1]} : vector<48x16xf32> to vector<16x16xf32>
    %13 = vector.extract_strided_slice %11 {offsets = [0, 0], sizes = [16, 16], strides = [1, 1]} : vector<32x16xf32> to vector<16x16xf32>
    %14 = arith.addf %12, %13 : vector<16x16xf32>
    %15 = arith.negf %14 : vector<16x16xf32>
    %16 = math.exp %15 : vector<16x16xf32>
    %cst_12 = arith.constant 1.000000e+00 : f32
    %17 = vector.broadcast %cst_12 : f32 to vector<16x16xf32>
    %18 = arith.addf %17, %16 : vector<16x16xf32>
    %19 = arith.divf %17, %18 : vector<16x16xf32>
    %20 = vector.extract_strided_slice %9 {offsets = [16, 0], sizes = [16, 16], strides = [1, 1]} : vector<48x16xf32> to vector<16x16xf32>
    %21 = vector.extract_strided_slice %11 {offsets = [16, 0], sizes = [16, 16], strides = [1, 1]} : vector<32x16xf32> to vector<16x16xf32>
    %22 = arith.addf %20, %21 : vector<16x16xf32>
    %23 = arith.negf %22 : vector<16x16xf32>
    %24 = math.exp %23 : vector<16x16xf32>
    %cst_13 = arith.constant 1.000000e+00 : f32
    %25 = vector.broadcast %cst_13 : f32 to vector<16x16xf32>
    %26 = arith.addf %25, %24 : vector<16x16xf32>
    %27 = arith.divf %25, %26 : vector<16x16xf32>
    %28 = vector.extract_strided_slice %9 {offsets = [32, 0], sizes = [16, 16], strides = [1, 1]} : vector<48x16xf32> to vector<16x16xf32>
    %c0_14 = arith.constant 0 : index
    %c0_15 = arith.constant 0 : index
    %29 = vector.load %arg6[%c0_14, %c0_15] : memref<16x16xf32, #tpu.memory_space<vmem>>, vector<16x16xf32>
    %30 = arith.mulf %27, %3 : vector<16x16xf32>
    %cst_16 = arith.constant dense<0.000000e+00> : vector<16x16xf32>
    %31 = tpu.matmul %29, %30, %cst_16 {dimension_numbers = #tpu.dot_dimension_numbers<[1], [0], [0], [1], [0, 0, 1, 1], [], []>} : vector<16x16xf32>, vector<16x16xf32>, vector<16x16xf32> -> vector<16x16xf32>
    %32 = arith.addf %28, %31 : vector<16x16xf32>
    %33 = math.tanh %32 : vector<16x16xf32>
    %cst_17 = arith.constant 1.000000e+00 : f32
    %34 = vector.broadcast %cst_17 : f32 to vector<16x16xf32>
    %35 = arith.subf %34, %19 : vector<16x16xf32>
    %36 = arith.mulf %35, %3 : vector<16x16xf32>
    %37 = arith.mulf %19, %33 : vector<16x16xf32>
    %38 = arith.addf %36, %37 : vector<16x16xf32>
    %c0_18 = arith.constant 0 : index
    %c0_19 = arith.constant 0 : index
    %39 = vector.load %arg10[%c0_18, %c0_19] : memref<16x16xf32, #tpu.memory_space<vmem>>, vector<16x16xf32>
    tpu.vector_store %arg10[%c0_18, %c0_19], %38 {strides = array<i32>} : memref<16x16xf32, #tpu.memory_space<vmem>>, vector<16x16xf32>,
    %c0_20 = arith.constant 0 : index
    %c0_21 = arith.constant 0 : index
    %c0_22 = arith.constant 0 : index
    %40 = vector.load %arg3[%c0_20, %c0_21, %c0_22] : memref<1x16x16xf32, #tpu.memory_space<vmem>>, vector<1x16x16xf32>
    %41 = vector.shape_cast %40 : vector<1x16x16xf32> to vector<16x16xf32>
    %cst_23 = arith.constant dense<0.000000e+00> : vector<16x16xf32>
    %42 = tpu.matmul %41, %38, %cst_23 {dimension_numbers = #tpu.dot_dimension_numbers<[1], [0], [0], [1], [0, 0, 1, 1], [], []>} : vector<16x16xf32>, vector<16x16xf32>, vector<16x16xf32> -> vector<16x16xf32>
    %c0_24 = arith.constant 0 : index
    %c0_25 = arith.constant 0 : index
    %c0_26 = arith.constant 0 : index
    %43 = vector.load %arg2[%c0_24, %c0_25, %c0_26] : memref<1x16x16xf32, #tpu.memory_space<vmem>>, vector<1x16x16xf32>
    %44 = vector.shape_cast %43 : vector<1x16x16xf32> to vector<16x16xf32>
    %cst_27 = arith.constant dense<0.000000e+00> : vector<16x16xf32>
    %45 = tpu.matmul %44, %42, %cst_27 {dimension_numbers = #tpu.dot_dimension_numbers<[1], [0], [0], [1], [0, 0, 1, 1], [], []>} : vector<16x16xf32>, vector<16x16xf32>, vector<16x16xf32> -> vector<16x16xf32>
    %cst_28 = arith.constant 0.000000e+00 : f32
    %46 = vector.broadcast %cst_28 : f32 to vector<16x16xf32>
    %47 = arith.maximumf %45, %46 : vector<16x16xf32>
    %c0_29 = arith.constant 0 : index
    %c0_30 = arith.constant 0 : index
    %c0_31 = arith.constant 0 : index
    %48 = vector.load %arg9[%c0_29, %c0_30, %c0_31] : memref<1x16x16xf32, #tpu.memory_space<vmem>>, vector<1x16x16xf32>
    %49 = vector.shape_cast %48 : vector<1x16x16xf32> to vector<16x16xf32>
    %50 = vector.shape_cast %47 : vector<16x16xf32> to vector<1x16x16xf32>
    tpu.vector_store %arg9[%c0_29, %c0_30, %c0_31], %50 {strides = array<i32>} : memref<1x16x16xf32, #tpu.memory_space<vmem>>, vector<1x16x16xf32>,
    return
  }
  func.func @transform_0(%arg0: i32) -> (i32, i32, i32) {
    %c0_i32 = arith.constant 0 : i32
    %c0_i32_0 = arith.constant 0 : i32
    %c0_i32_1 = arith.constant 0 : i32
    return %arg0, %c0_i32, %c0_i32_0 : i32, i32, i32
  }
  func.func @transform_1(%arg0: i32) -> (i32, i32, i32) {
    %c0_i32 = arith.constant 0 : i32
    %c0_i32_0 = arith.constant 0 : i32
    %c0_i32_1 = arith.constant 0 : i32
    return %arg0, %c0_i32, %c0_i32_0 : i32, i32, i32
  }
  func.func @transform_2(%arg0: i32) -> (i32, i32, i32) {
    %c0_i32 = arith.constant 0 : i32
    %c0_i32_0 = arith.constant 0 : i32
    %c0_i32_1 = arith.constant 0 : i32
    return %arg0, %c0_i32, %c0_i32_0 : i32, i32, i32
  }
  func.func @transform_3(%arg0: i32) -> (i32, i32) {
    %c0_i32 = arith.constant 0 : i32
    %c0_i32_0 = arith.constant 0 : i32
    %c0_i32_1 = arith.constant 0 : i32
    return %c0_i32, %c0_i32_0 : i32, i32
  }
  func.func @transform_4(%arg0: i32) -> (i32, i32) {
    %c0_i32 = arith.constant 0 : i32
    %c0_i32_0 = arith.constant 0 : i32
    %c0_i32_1 = arith.constant 0 : i32
    return %c0_i32, %c0_i32_0 : i32, i32
  }
  func.func @transform_5(%arg0: i32) -> (i32, i32) {
    %c0_i32 = arith.constant 0 : i32
    %c0_i32_0 = arith.constant 0 : i32
    %c0_i32_1 = arith.constant 0 : i32
    return %c0_i32, %c0_i32_0 : i32, i32
  }
  func.func @transform_6(%arg0: i32) -> (i32, i32) {
    %c0_i32 = arith.constant 0 : i32
    %c0_i32_0 = arith.constant 0 : i32
    %c0_i32_1 = arith.constant 0 : i32
    return %c0_i32, %c0_i32_0 : i32, i32
  }
  func.func @transform_7(%arg0: i32) -> (i32, i32) {
    %c0_i32 = arith.constant 0 : i32
    %c0_i32_0 = arith.constant 0 : i32
    %c0_i32_1 = arith.constant 0 : i32
    return %c0_i32, %c0_i32_0 : i32, i32
  }
  func.func @transform_8(%arg0: i32) -> (i32, i32, i32) {
    %c0_i32 = arith.constant 0 : i32
    %c0_i32_0 = arith.constant 0 : i32
    %c0_i32_1 = arith.constant 0 : i32
    return %arg0, %c0_i32, %c0_i32_0 : i32, i32, i32
  }
}

module attributes {stable_mosaic.version = 11 : i64} {
  func.func @_grcu_kernel(%arg0: i32, %arg1: memref<1x8x16xf32, #tpu.memory_space<vmem>>, %arg2: memref<1x16x16xf32, #tpu.memory_space<vmem>>, %arg3: memref<1x16x8xf32, #tpu.memory_space<vmem>>, %arg4: memref<24x8xf32, #tpu.memory_space<vmem>>, %arg5: memref<16x8xf32, #tpu.memory_space<vmem>>, %arg6: memref<8x8xf32, #tpu.memory_space<vmem>>, %arg7: memref<24x16xf32, #tpu.memory_space<vmem>>, %arg8: memref<8x16xf32, #tpu.memory_space<vmem>>, %arg9: memref<1x16x16xf32, #tpu.memory_space<vmem>>, %arg10: memref<8x16xf32, #tpu.memory_space<vmem>>) attributes {dimension_semantics = [#tpu.dimension_semantics<arbitrary>], iteration_bounds = array<i64: 3>, scalar_prefetch = 0 : i64, scratch_operands = 1 : i64, tpu.core_type = #tpu.core_type<tc>, window_params = [{transform_indices = @transform_0, window_bounds = array<i64: 1, 8, 16>}, {transform_indices = @transform_1, window_bounds = array<i64: 1, 16, 16>}, {transform_indices = @transform_2, window_bounds = array<i64: 1, 16, 8>}, {pipeline_mode = #tpu.pipeline_mode<synchronous>, transform_indices = @transform_3, window_bounds = array<i64: 24, 8>}, {pipeline_mode = #tpu.pipeline_mode<synchronous>, transform_indices = @transform_4, window_bounds = array<i64: 16, 8>}, {pipeline_mode = #tpu.pipeline_mode<synchronous>, transform_indices = @transform_5, window_bounds = array<i64: 8, 8>}, {pipeline_mode = #tpu.pipeline_mode<synchronous>, transform_indices = @transform_6, window_bounds = array<i64: 24, 16>}, {pipeline_mode = #tpu.pipeline_mode<synchronous>, transform_indices = @transform_7, window_bounds = array<i64: 8, 16>}, {transform_indices = @transform_8, window_bounds = array<i64: 1, 16, 16>}]} {
    %c0_i32 = arith.constant 0 : i32
    %0 = arith.cmpi eq, %arg0, %c0_i32 : i32
    %1 = arith.extui %0 : i1 to i32
    %c0_i32_0 = arith.constant 0 : i32
    %2 = arith.cmpi ne, %1, %c0_i32_0 : i32
    scf.if %2 {
      %c0_32 = arith.constant 0 : index
      %c0_33 = arith.constant 0 : index
      %51 = vector.load %arg8[%c0_32, %c0_33] : memref<8x16xf32, #tpu.memory_space<vmem>>, vector<8x16xf32>
      %c0_34 = arith.constant 0 : index
      %c0_35 = arith.constant 0 : index
      %52 = vector.load %arg10[%c0_34, %c0_35] : memref<8x16xf32, #tpu.memory_space<vmem>>, vector<8x16xf32>
      tpu.vector_store %arg10[%c0_34, %c0_35], %51 {strides = array<i32>} : memref<8x16xf32, #tpu.memory_space<vmem>>, vector<8x16xf32>,
    } else {
    }
    %c0 = arith.constant 0 : index
    %c0_1 = arith.constant 0 : index
    %3 = vector.load %arg10[%c0, %c0_1] : memref<8x16xf32, #tpu.memory_space<vmem>>, vector<8x16xf32>
    %c0_2 = arith.constant 0 : index
    %c0_3 = arith.constant 0 : index
    %c0_4 = arith.constant 0 : index
    %4 = vector.load %arg1[%c0_2, %c0_3, %c0_4] : memref<1x8x16xf32, #tpu.memory_space<vmem>>, vector<1x8x16xf32>
    %5 = vector.shape_cast %4 : vector<1x8x16xf32> to vector<8x16xf32>
    %c0_5 = arith.constant 0 : index
    %c0_6 = arith.constant 0 : index
    %6 = vector.load %arg4[%c0_5, %c0_6] : memref<24x8xf32, #tpu.memory_space<vmem>>, vector<24x8xf32>
    %cst = arith.constant dense<0.000000e+00> : vector<24x16xf32>
    %7 = tpu.matmul %6, %5, %cst {dimension_numbers = #tpu.dot_dimension_numbers<[1], [0], [0], [1], [0, 0, 1, 1], [], []>} : vector<24x8xf32>, vector<8x16xf32>, vector<24x16xf32> -> vector<24x16xf32>
    %c0_7 = arith.constant 0 : index
    %c0_8 = arith.constant 0 : index
    %8 = vector.load %arg7[%c0_7, %c0_8] : memref<24x16xf32, #tpu.memory_space<vmem>>, vector<24x16xf32>
    %9 = arith.addf %7, %8 : vector<24x16xf32>
    %c0_9 = arith.constant 0 : index
    %c0_10 = arith.constant 0 : index
    %10 = vector.load %arg5[%c0_9, %c0_10] : memref<16x8xf32, #tpu.memory_space<vmem>>, vector<16x8xf32>
    %cst_11 = arith.constant dense<0.000000e+00> : vector<16x16xf32>
    %11 = tpu.matmul %10, %3, %cst_11 {dimension_numbers = #tpu.dot_dimension_numbers<[1], [0], [0], [1], [0, 0, 1, 1], [], []>} : vector<16x8xf32>, vector<8x16xf32>, vector<16x16xf32> -> vector<16x16xf32>
    %12 = vector.extract_strided_slice %9 {offsets = [0, 0], sizes = [8, 16], strides = [1, 1]} : vector<24x16xf32> to vector<8x16xf32>
    %13 = vector.extract_strided_slice %11 {offsets = [0, 0], sizes = [8, 16], strides = [1, 1]} : vector<16x16xf32> to vector<8x16xf32>
    %14 = arith.addf %12, %13 : vector<8x16xf32>
    %15 = arith.negf %14 : vector<8x16xf32>
    %16 = math.exp %15 : vector<8x16xf32>
    %cst_12 = arith.constant 1.000000e+00 : f32
    %17 = vector.broadcast %cst_12 : f32 to vector<8x16xf32>
    %18 = arith.addf %17, %16 : vector<8x16xf32>
    %19 = arith.divf %17, %18 : vector<8x16xf32>
    %20 = vector.extract_strided_slice %9 {offsets = [8, 0], sizes = [8, 16], strides = [1, 1]} : vector<24x16xf32> to vector<8x16xf32>
    %21 = vector.extract_strided_slice %11 {offsets = [8, 0], sizes = [8, 16], strides = [1, 1]} : vector<16x16xf32> to vector<8x16xf32>
    %22 = arith.addf %20, %21 : vector<8x16xf32>
    %23 = arith.negf %22 : vector<8x16xf32>
    %24 = math.exp %23 : vector<8x16xf32>
    %cst_13 = arith.constant 1.000000e+00 : f32
    %25 = vector.broadcast %cst_13 : f32 to vector<8x16xf32>
    %26 = arith.addf %25, %24 : vector<8x16xf32>
    %27 = arith.divf %25, %26 : vector<8x16xf32>
    %28 = vector.extract_strided_slice %9 {offsets = [16, 0], sizes = [8, 16], strides = [1, 1]} : vector<24x16xf32> to vector<8x16xf32>
    %c0_14 = arith.constant 0 : index
    %c0_15 = arith.constant 0 : index
    %29 = vector.load %arg6[%c0_14, %c0_15] : memref<8x8xf32, #tpu.memory_space<vmem>>, vector<8x8xf32>
    %30 = arith.mulf %27, %3 : vector<8x16xf32>
    %cst_16 = arith.constant dense<0.000000e+00> : vector<8x16xf32>
    %31 = tpu.matmul %29, %30, %cst_16 {dimension_numbers = #tpu.dot_dimension_numbers<[1], [0], [0], [1], [0, 0, 1, 1], [], []>} : vector<8x8xf32>, vector<8x16xf32>, vector<8x16xf32> -> vector<8x16xf32>
    %32 = arith.addf %28, %31 : vector<8x16xf32>
    %33 = math.tanh %32 : vector<8x16xf32>
    %cst_17 = arith.constant 1.000000e+00 : f32
    %34 = vector.broadcast %cst_17 : f32 to vector<8x16xf32>
    %35 = arith.subf %34, %19 : vector<8x16xf32>
    %36 = arith.mulf %35, %3 : vector<8x16xf32>
    %37 = arith.mulf %19, %33 : vector<8x16xf32>
    %38 = arith.addf %36, %37 : vector<8x16xf32>
    %c0_18 = arith.constant 0 : index
    %c0_19 = arith.constant 0 : index
    %39 = vector.load %arg10[%c0_18, %c0_19] : memref<8x16xf32, #tpu.memory_space<vmem>>, vector<8x16xf32>
    tpu.vector_store %arg10[%c0_18, %c0_19], %38 {strides = array<i32>} : memref<8x16xf32, #tpu.memory_space<vmem>>, vector<8x16xf32>,
    %c0_20 = arith.constant 0 : index
    %c0_21 = arith.constant 0 : index
    %c0_22 = arith.constant 0 : index
    %40 = vector.load %arg3[%c0_20, %c0_21, %c0_22] : memref<1x16x8xf32, #tpu.memory_space<vmem>>, vector<1x16x8xf32>
    %41 = vector.shape_cast %40 : vector<1x16x8xf32> to vector<16x8xf32>
    %cst_23 = arith.constant dense<0.000000e+00> : vector<16x16xf32>
    %42 = tpu.matmul %41, %38, %cst_23 {dimension_numbers = #tpu.dot_dimension_numbers<[1], [0], [0], [1], [0, 0, 1, 1], [], []>} : vector<16x8xf32>, vector<8x16xf32>, vector<16x16xf32> -> vector<16x16xf32>
    %c0_24 = arith.constant 0 : index
    %c0_25 = arith.constant 0 : index
    %c0_26 = arith.constant 0 : index
    %43 = vector.load %arg2[%c0_24, %c0_25, %c0_26] : memref<1x16x16xf32, #tpu.memory_space<vmem>>, vector<1x16x16xf32>
    %44 = vector.shape_cast %43 : vector<1x16x16xf32> to vector<16x16xf32>
    %cst_27 = arith.constant dense<0.000000e+00> : vector<16x16xf32>
    %45 = tpu.matmul %44, %42, %cst_27 {dimension_numbers = #tpu.dot_dimension_numbers<[1], [0], [0], [1], [0, 0, 1, 1], [], []>} : vector<16x16xf32>, vector<16x16xf32>, vector<16x16xf32> -> vector<16x16xf32>
    %cst_28 = arith.constant 0.000000e+00 : f32
    %46 = vector.broadcast %cst_28 : f32 to vector<16x16xf32>
    %47 = arith.maximumf %45, %46 : vector<16x16xf32>
    %c0_29 = arith.constant 0 : index
    %c0_30 = arith.constant 0 : index
    %c0_31 = arith.constant 0 : index
    %48 = vector.load %arg9[%c0_29, %c0_30, %c0_31] : memref<1x16x16xf32, #tpu.memory_space<vmem>>, vector<1x16x16xf32>
    %49 = vector.shape_cast %48 : vector<1x16x16xf32> to vector<16x16xf32>
    %50 = vector.shape_cast %47 : vector<16x16xf32> to vector<1x16x16xf32>
    tpu.vector_store %arg9[%c0_29, %c0_30, %c0_31], %50 {strides = array<i32>} : memref<1x16x16xf32, #tpu.memory_space<vmem>>, vector<1x16x16xf32>,
    return
  }
  func.func @transform_0(%arg0: i32) -> (i32, i32, i32) {
    %c0_i32 = arith.constant 0 : i32
    %c0_i32_0 = arith.constant 0 : i32
    %c0_i32_1 = arith.constant 0 : i32
    return %arg0, %c0_i32, %c0_i32_0 : i32, i32, i32
  }
  func.func @transform_1(%arg0: i32) -> (i32, i32, i32) {
    %c0_i32 = arith.constant 0 : i32
    %c0_i32_0 = arith.constant 0 : i32
    %c0_i32_1 = arith.constant 0 : i32
    return %arg0, %c0_i32, %c0_i32_0 : i32, i32, i32
  }
  func.func @transform_2(%arg0: i32) -> (i32, i32, i32) {
    %c0_i32 = arith.constant 0 : i32
    %c0_i32_0 = arith.constant 0 : i32
    %c0_i32_1 = arith.constant 0 : i32
    return %arg0, %c0_i32, %c0_i32_0 : i32, i32, i32
  }
  func.func @transform_3(%arg0: i32) -> (i32, i32) {
    %c0_i32 = arith.constant 0 : i32
    %c0_i32_0 = arith.constant 0 : i32
    %c0_i32_1 = arith.constant 0 : i32
    return %c0_i32, %c0_i32_0 : i32, i32
  }
  func.func @transform_4(%arg0: i32) -> (i32, i32) {
    %c0_i32 = arith.constant 0 : i32
    %c0_i32_0 = arith.constant 0 : i32
    %c0_i32_1 = arith.constant 0 : i32
    return %c0_i32, %c0_i32_0 : i32, i32
  }
  func.func @transform_5(%arg0: i32) -> (i32, i32) {
    %c0_i32 = arith.constant 0 : i32
    %c0_i32_0 = arith.constant 0 : i32
    %c0_i32_1 = arith.constant 0 : i32
    return %c0_i32, %c0_i32_0 : i32, i32
  }
  func.func @transform_6(%arg0: i32) -> (i32, i32) {
    %c0_i32 = arith.constant 0 : i32
    %c0_i32_0 = arith.constant 0 : i32
    %c0_i32_1 = arith.constant 0 : i32
    return %c0_i32, %c0_i32_0 : i32, i32
  }
  func.func @transform_7(%arg0: i32) -> (i32, i32) {
    %c0_i32 = arith.constant 0 : i32
    %c0_i32_0 = arith.constant 0 : i32
    %c0_i32_1 = arith.constant 0 : i32
    return %c0_i32, %c0_i32_0 : i32, i32
  }
  func.func @transform_8(%arg0: i32) -> (i32, i32, i32) {
    %c0_i32 = arith.constant 0 : i32
    %c0_i32_0 = arith.constant 0 : i32
    %c0_i32_1 = arith.constant 0 : i32
    return %arg0, %c0_i32, %c0_i32_0 : i32, i32, i32
  }
}

</mosaic_0001>

<bundles_post_ra>
// kernel: egcn_forward.2
= control target key start
LH: loop header
LB: loop body
LE: loop exit
PB: predicated region body
PF: predicated region fallthrough
CT: control target
= control target key end

     0   :  { %s1031_s27 = smov 0   ;;  %s1115_s0 = inlined_call_operand.vmem [shape: f32[3,8,16], index: 0, kind: input, shape index: {}]   ;;  %s1116_s1 = inlined_call_operand.vmem [shape: f32[3,16,16], index: 1, kind: input, shape index: {}]   ;;  %s1117_s2 = inlined_call_operand.vmem [shape: f32[3,16,8], index: 2, kind: input, shape index: {}]   ;;  %s1118_s3 = inlined_call_operand.vmem [shape: f32[24,8], index: 3, kind: input, shape index: {}]   ;;  %s1119_s4 = inlined_call_operand.vmem [shape: f32[16,8], index: 4, kind: input, shape index: {}]   ;;  %s1120_s5 = inlined_call_operand.vmem [shape: f32[8,8], index: 5, kind: input, shape index: {}]   ;;  %s1121_s6 = inlined_call_operand.vmem [shape: f32[24,16], index: 6, kind: input, shape index: {}]   ;;  %s1122_s7 = inlined_call_operand.vmem [shape: f32[8,16], index: 7, kind: input, shape index: {}]   ;;  %s1123_s8 = inlined_call_operand.vmem [shape: f32[3,16,16], index: 8, kind: output, shape index: {}]  }
   0x1 LB: > { %s877_s28 = sadd.s32 4294967295, %s982_s27   ;;  %p881_p0 = scmp.ge.s32.totalorder %s982_s27, 1  ;;  %s982_s27 = sphi %s1031_s27, %s18_s27  }
   0x2   : > { %p281_p1 = scmp.lt.s32.totalorder %s982_s27, 4 }
   0x4   : > { %p282_p2 = pnand %p881_p0, %p281_p1 }
   0x5   : > { %p324_p3 = scmp.lt.s32.totalorder (!%p282_p2), %s877_s28, 2  ;;  %p889_p4 = scmp.ne.s32.totalorder (!%p282_p2), %s877_s28, 0 }
   0x6   : > { %285 = sbr.rel (%p282_p2) target bundleno = 868 (0x364), region = 52 }
   0xb   : > { %s325_s29 = scalar_select %p324_p3, %s877_s28, 2 }
   0xc   : > { %346 = sbr.rel (%p889_p4) target bundleno = 19 (0x13), region = 56 }
   0xd   : > { %s882_s30 = sshll.u32 %s325_s29, 3  ;;  %s904_s9 = sshll.u32 %s325_s29, 4 }
   0xe   : > { %s327_s12 = scalar_lea.vmem %s1115_s0, %s882_s30  ;;  %s1045_s15 = scalar_lea.vmem %s1116_s1, %s904_s9 }
   0xf   : > { %s1050_s18 = scalar_lea.vmem %s1117_s2, %s904_s9  ;;  %s1055_s21 = scalar_lea.vmem %s1123_s8, %s904_s9 }
  0x11   : > { %v347_v0 = vld [vmem:[%s1122_s7] sm:$0xff]  ;;  %vm348_vm0 = vcmask 130048  }
  0x12   : > { %349 = vst.msk [vmem:[#allocation2] sm:$0xff] %vm348_vm0, %v347_v0 }
  0x13 PF: > { %v351_v2 = vld [vmem:[%s327_s12] sm:$0xff]  ;;  %vm358_vm1 = vcmask 64512   ;;  %v984_v4 = vmov 0.0   ;;  %v449_v6 = vld [vmem:[%s1119_s4 + $0x8] sm:$0xff]  ;;  %vm985_vm2 = vmmov 0   ;;  %v354_v8 = vld [vmem:[%s1118_s3 + $0x10] sm:$0xff] }
  0x14   : > { %v448_v3 = vld [vmem:[%s1119_s4] sm:$0xff]  ;;  %923 = vmatprep.subr.mxu0 %v984_v4  ;;  %925 = vmatprep.mubr.msk.f32.mxu0 %vm985_vm2, %v984_v4  ;;  %v353_v7 = vld [vmem:[%s1118_s3 + $0x8] sm:$0xff]  ;;  %v357_v33 = vld [vmem:[%s1121_s6 + $0x10] sm:$0xff]  ;;  %vm626_vm3 = vcmask 130048  }
  0x15   : > { %v352_v5 = vld [vmem:[%s1118_s3] sm:$0xff]  ;;  %924 = vmatpush3.msra.mxu0 %v351_v2  ;;  %936 = vmatprep.mubr.msk.f32.mxu1 %vm358_vm1, %v448_v3  ;;  %v356_v11 = vld [vmem:[%s1121_s6 + $0x8] sm:$0xff] }
  0x16   : > { %926 = vmatmul.mubr.msk.f32.vlgmr.msra.gmra.mxu0 %vm358_vm1, %v352_v5  ;;  %v545_v22 = vld [vmem:[%s1120_s5] sm:$0xff]  ;;  %v629_v44 = vld [vmem:[%s1050_s18 + $0x8] sm:$0xff] }
  0x17   : > { %928 = vmatprep.mubr.msk.f32.mxu0 %vm985_vm2, %v984_v4  ;;  %v628_v25 = vld [vmem:[%s1050_s18] sm:$0xff]  ;;  %v712_v48 = vld [vmem:[%s1045_s15 + $0x8] sm:$0xff] }
  0x18   : > { %v355_v26 = vld [vmem:[%s1121_s6] sm:$0xff] }
  0x19   : > { %v1060_v1 = vld [vmem:[#allocation2] sm:$0xff] }
  0x1a   : > { %934 = vmatprep.subr.mxu1 %v1060_v1  ;;  %929 = vmatmul.mubr.msk.f32.gmra.mxu0 %vm358_vm1, %v353_v7  ;;  %v711_v45 = vld [vmem:[%s1045_s15] sm:$0xff] }
  0x1b   : > { %935 = vmatpush3.msra.mxu1 %v1060_v1  ;;  %931 = vmatprep.mubr.msk.f32.mxu0 %vm985_vm2, %v984_v4 }
  0x1c   : > { %937 = vmatmul.mubr.msk.f32.vlgmr.msra.gmra.mxu1 %vm358_vm1, %v449_v6  ;;  %939 = vmatprep.subr.mxu1 %v984_v4 }
  0x1d   : > { %941 = vmatprep.mubr.msk.f32.mxu1 %vm985_vm2, %v984_v4 }
  0x1e   : > { %932 = vmatmul.mubr.msk.f32.gmra.mxu0 %vm358_vm1, %v354_v8 }
  0x1f   : > { %953 = vmatprep.mubr.msk.f32.mxu0 %vm626_vm3, %v711_v45 }
  0xd6   : > { %v434_v9 = vpop.f32.mrf.mxu0 }
  0xd7   : > { %v435_v27 = vadd.f32 %v434_v9, %v355_v26 }
  0xd8   : > { %v927_v10 = vpop.f32.mrf.mxu0 }
  0xda   : > { %v439_v12 = vpop.f32.mrf.mxu0 }
  0xdb   : > { %v440_v13 = vadd.f32 %v439_v12, %v356_v11 }
  0xdc   : > { %v938_v14 = vpop.f32.mrf.mxu1  ;;  %v930_v15 = vpop.f32.mrf.mxu0 }
  0xdd   : > { %v538_v16 = vadd.f32 %v938_v14, %v440_v13 }
  0xde   : > { %v444_v23 = vpop.f32.mrf.mxu0  ;;  %v522_v28 = vpop.f32.mrf.mxu1 }
  0xdf   : > { %v896_v17 = vmul.f32 -1.442695, %v538_v16  ;;  %v531_v29 = vadd.f32 %v522_v28, %v435_v27  ;;  %v445_v34 = vadd.f32 %v444_v23, %v357_v33 }
  0xe0   : > { %v933_v24 = vpop.f32.mrf.mxu0 }
  0xe1   : > { %966 = vpow2.f32 %v896_v17  ;;  %v895_v30 = vmul.f32 -1.442695, %v531_v29 }
  0xee   : > { %v967_v18 = vpop.eup %966 }
  0xef   : > { %v542_v19 = vadd.f32 1.0, %v967_v18 }
  0xf1   : > { %968 = vrcp.f32 %v542_v19 }
  0xf2   : > { %970 = vpow2.f32 %v895_v30 }
  0xfe   : > { %v969_v20 = vpop.eup %968 }
  0xff   : > { %v546_v21 = vmul.f32 %v969_v20, %v1060_v1  ;;  %v971_v31 = vpop.eup %970 }
 0x100   : > { %v535_v32 = vadd.f32 1.0, %v971_v31 }
 0x101   : > { %940 = vmatpush3.msra.mxu1 %v546_v21 }
 0x102   : > { %942 = vmatmul.mubr.msk.f32.vlgmr.msra.gmra.mxu1 %vm358_vm1, %v545_v22  ;;  %972 = vrcp.f32 %v535_v32 }
 0x103   : > { %946 = vmatprep.mubr.msk.f32.mxu1 %vm358_vm1, %v628_v25 }
 0x10f   : > { %v973_v38 = vpop.eup %972 }
 0x110   : > { %v622_v39 = vsub.f32 1.0, %v973_v38 }
 0x112   : > { %v623_v41 = vmul.f32 %v622_v39, %v1060_v1 }
 0x1c2   : > { %v616_v35 = vpop.f32.mrf.mxu1 }
 0x1c3   : > { %v620_v36 = vadd.f32 %v616_v35, %v445_v34 }
 0x1c4   : > { %v943_v37 = vpop.f32.mrf.mxu1 }
 0x1c5   : > { %974 = vtanh.f32 %v620_v36 }
 0x1d2   : > { %v975_v40 = vpop.eup %974 }
 0x1d3   : > { %v624_v42 = vmul.f32 %v975_v40, %v973_v38 }
 0x1d5   : > { %v625_v43 = vadd.f32 %v624_v42, %v623_v41 }
 0x1d7   : > { %944 = vmatprep.subr.mxu1 %v625_v43  ;;  %627 = vst.msk [vmem:[#allocation2] sm:$0xff] %vm626_vm3, %v625_v43 }
 0x1d8   : > { %945 = vmatpush3.msra.mxu1 %v625_v43 }
 0x1d9   : > { %947 = vmatmul.mubr.msk.f32.vlgmr.msra.gmra.mxu1 %vm358_vm1, %v629_v44 }
 0x299   : > { %v948_v46 = vpop.f32.mrf.mxu1 }
 0x29a   : > { %949 = vmatprep.subr.mxu0 %v948_v46 }
 0x29b   : > { %v702_v47 = vpop.f32.mrf.mxu1  ;;  %950 = vmatpush3.msra.mxu0 %v948_v46 }
 0x29c   : > { %951 = vmatprep.subr.mxu0 %v702_v47 }
 0x29d   : > { %952 = vmatpush3.msra.mxu0 %v702_v47 }
 0x29e   : > { %954 = vmatmul.mubr.msk.f32.vlgmr.msra.gmra.mxu0 %vm626_vm3, %v712_v48 }
 0x35e   : > { %v955_v49 = vpop.f32.mrf.mxu0 }
 0x35f   : > { %v795_v50 = vmax.f32 %v955_v49, 0.0 }
 0x360   : > { %v785_v51 = vpop.f32.mrf.mxu0 }
 0x361   : > { %797 = vst.msk [vmem:[%s1055_s21 + $0x8] sm:$0xff] %vm626_vm3, %v795_v50  ;;  %v794_v52 = vmax.f32 %v785_v51, 0.0 }
 0x363   : > { %796 = vst.msk [vmem:[%s1055_s21] sm:$0xff] %vm626_vm3, %v794_v52 }
 0x364 PF: > { %s18_s27 = sadd.s32 1, %s982_s27  }
 0x365   : > { %p15_p5 = scmp.ge.s32.totalorder %s18_s27, 5  }
 0x367   :  { %17 = sbr.rel (!%p15_p5) target bundleno = 1 (0x1), region = 92 }

// kernel: egcn_forward.3
= control target key start
LH: loop header
LB: loop body
LE: loop exit
PB: predicated region body
PF: predicated region fallthrough
CT: control target
= control target key end

     0   :  { %s1153_s27 = smov 0   ;;  %s1280_s0 = inlined_call_operand.vmem [shape: f32[3,16,16], index: 0, kind: input, shape index: {}]   ;;  %s1281_s1 = inlined_call_operand.vmem [shape: f32[3,16,16], index: 1, kind: input, shape index: {}]   ;;  %s1282_s2 = inlined_call_operand.vmem [shape: f32[3,16,16], index: 2, kind: input, shape index: {}]   ;;  %s1283_s3 = inlined_call_operand.vmem [shape: f32[48,16], index: 3, kind: input, shape index: {}]   ;;  %s1284_s4 = inlined_call_operand.vmem [shape: f32[32,16], index: 4, kind: input, shape index: {}]   ;;  %s1285_s5 = inlined_call_operand.vmem [shape: f32[16,16], index: 5, kind: input, shape index: {}]   ;;  %s1286_s6 = inlined_call_operand.vmem [shape: f32[48,16], index: 6, kind: input, shape index: {}]   ;;  %s1287_s7 = inlined_call_operand.vmem [shape: f32[16,16], index: 7, kind: input, shape index: {}]   ;;  %s1288_s8 = inlined_call_operand.vmem [shape: f32[3,16,16], index: 8, kind: output, shape index: {}]  }
   0x1 LB: > { %s962_s28 = sadd.s32 4294967295, %s1106_s27   ;;  %p966_p0 = scmp.ge.s32.totalorder %s1106_s27, 1  ;;  %s1106_s27 = sphi %s1153_s27, %s18_s27  }
   0x2   : > { %p282_p1 = scmp.lt.s32.totalorder %s1106_s27, 4 }
   0x4   : > { %p283_p2 = pnand %p966_p0, %p282_p1 }
   0x5   : > { %p326_p3 = scmp.lt.s32.totalorder (!%p283_p2), %s962_s28, 2  ;;  %p975_p4 = scmp.ne.s32.totalorder (!%p283_p2), %s962_s28, 0 }
   0x6   : > { %286 = sbr.rel (%p283_p2) target bundleno = 879 (0x36f), region = 52 }
   0xb   : > { %s327_s29 = scalar_select %p326_p3, %s962_s28, 2 }
   0xc   : > { %349 = sbr.rel (%p975_p4) target bundleno = 19 (0x13), region = 56 }
   0xd   : > { %s998_s30 = sshll.u32 %s327_s29, 4 }
   0xe   : > { %s330_s11 = scalar_lea.vmem %s1280_s0, %s998_s30  ;;  %s1167_s14 = scalar_lea.vmem %s1281_s1, %s998_s30 }
   0xf   : > { %s1172_s17 = scalar_lea.vmem %s1282_s2, %s998_s30  ;;  %s1177_s20 = scalar_lea.vmem %s1288_s8, %s998_s30 }
  0x11   : > { %v350_v0 = vld [vmem:[%s1287_s7] sm:$0xff]  ;;  %vm352_vm0 = vcmask 130048   ;;  %v351_v1 = vld [vmem:[%s1287_s7 + $0x8] sm:$0xff] }
  0x12   : > { %353 = vst.msk [vmem:[#allocation2] sm:$0xff] %vm352_vm0, %v350_v0  ;;  %354 = vst.msk [vmem:[#allocation2 + $0x8] sm:$0xff] %vm352_vm0, %v351_v1 }
  0x13 PF: > { %v358_v2 = vld [vmem:[%s330_s11 + $0x8] sm:$0xff]  ;;  %v357_v4 = vld [vmem:[%s330_s11] sm:$0xff]  ;;  %vm371_vm1 = vcmask 130048   ;;  %v361_v10 = vld [vmem:[%s1283_s3 + $0x10] sm:$0xff] }
  0x14   : > { %1028 = vmatprep.subr.mxu0 %v358_v2  ;;  %v359_v6 = vld [vmem:[%s1283_s3] sm:$0xff]  ;;  %v360_v8 = vld [vmem:[%s1283_s3 + $0x8] sm:$0xff]  ;;  %v487_v11 = vld [vmem:[%s1284_s4 + $0x10] sm:$0xff] }
  0x15   : > { %1029 = vmatpush3.msra.mxu0 %v358_v2  ;;  %v485_v7 = vld [vmem:[%s1284_s4] sm:$0xff]  ;;  %v486_v9 = vld [vmem:[%s1284_s4 + $0x8] sm:$0xff]  ;;  %1032 = vmatprep.mubr.msk.f32.mxu0 %vm371_vm1, %v359_v6  ;;  %v362_v12 = vld [vmem:[%s1283_s3 + $0x18] sm:$0xff] }
  0x16   : > { %1030 = vmatprep.subr.mxu0 %v357_v4  ;;  %1045 = vmatprep.mubr.msk.f32.mxu1 %vm371_vm1, %v485_v7  ;;  %v488_v13 = vld [vmem:[%s1284_s4 + $0x18] sm:$0xff]  ;;  %v363_v14 = vld [vmem:[%s1283_s3 + $0x20] sm:$0xff]  ;;  %v364_v15 = vld [vmem:[%s1283_s3 + $0x28] sm:$0xff] }
  0x17   : > { %1031 = vmatpush3.msra.mxu0 %v357_v4  ;;  %v614_v16 = vld [vmem:[%s1285_s5] sm:$0xff]  ;;  %v366_v17 = vld [vmem:[%s1286_s6 + $0x8] sm:$0xff]  ;;  %v368_v24 = vld [vmem:[%s1286_s6 + $0x18] sm:$0xff] }
  0x18   : > { %1033 = vmatmul.mubr.msk.f32.vlgmr.msra.gmra.mxu0 %vm371_vm1, %v360_v8  ;;  %v365_v20 = vld [vmem:[%s1286_s6] sm:$0xff]  ;;  %v367_v29 = vld [vmem:[%s1286_s6 + $0x10] sm:$0xff]  ;;  %v615_v47 = vld [vmem:[%s1285_s5 + $0x8] sm:$0xff] }
  0x19   : > { %v1185_v3 = vld [vmem:[#allocation2 + $0x8] sm:$0xff]  ;;  %v1188_v5 = vld [vmem:[#allocation2] sm:$0xff]  ;;  %1035 = vmatprep.mubr.msk.f32.mxu0 %vm371_vm1, %v361_v10 }
  0x1a   : > { %1041 = vmatprep.subr.mxu1 %v1185_v3  ;;  %v713_v48 = vld [vmem:[%s1172_s17] sm:$0xff]  ;;  %v370_v54 = vld [vmem:[%s1286_s6 + $0x28] sm:$0xff] }
  0x1b   : > { %1042 = vmatpush3.msra.mxu1 %v1185_v3  ;;  %v369_v59 = vld [vmem:[%s1286_s6 + $0x20] sm:$0xff] }
  0x1c   : > { %1043 = vmatprep.subr.mxu1 %v1188_v5  ;;  %1036 = vmatmul.mubr.msk.f32.gmra.mxu0 %vm371_vm1, %v362_v12 }
  0x1d   : > { %1044 = vmatpush3.msra.mxu1 %v1188_v5  ;;  %1038 = vmatprep.mubr.msk.f32.mxu0 %vm371_vm1, %v363_v14 }
  0x1e   : > { %1046 = vmatmul.mubr.msk.f32.vlgmr.msra.gmra.mxu1 %vm371_vm1, %v486_v9 }
  0x1f   : > { %1048 = vmatprep.mubr.msk.f32.mxu1 %vm371_vm1, %v487_v11 }
  0x20   : > { %1039 = vmatmul.mubr.msk.f32.gmra.mxu0 %vm371_vm1, %v364_v15  ;;  %v714_v15 = vld [vmem:[%s1172_s17 + $0x8] sm:$0xff] }
  0x21   : > { %1062 = vmatprep.mubr.msk.f32.mxu0 %vm371_vm1, %v713_v48 }
  0x22   : > { %1049 = vmatmul.mubr.msk.f32.gmra.mxu1 %vm371_vm1, %v488_v13 }
  0x23   : > { %1055 = vmatprep.mubr.msk.f32.mxu1 %vm371_vm1, %v614_v16 }
  0xd8   : > { %v1034_v18 = vpop.f32.mrf.mxu0 }
  0xd9   : > { %v462_v21 = vadd.f32 %v1034_v18, %v366_v17  ;;  %v797_v17 = vld [vmem:[%s1167_s14 + $0x8] sm:$0xff] }
  0xda   : > { %v456_v22 = vpop.f32.mrf.mxu0 }
  0xdb   : > { %v457_v26 = vadd.f32 %v456_v22, %v365_v20 }
  0xdc   : > { %v1037_v27 = vpop.f32.mrf.mxu0 }
  0xdd   : > { %v472_v31 = vadd.f32 %v1037_v27, %v368_v24 }
  0xde   : > { %v1047_v19 = vpop.f32.mrf.mxu1  ;;  %v466_v32 = vpop.f32.mrf.mxu0 }
  0xdf   : > { %v587_v25 = vadd.f32 %v1047_v19, %v462_v21  ;;  %v467_v34 = vadd.f32 %v466_v32, %v367_v29 }
  0xe0   : > { %v567_v23 = vpop.f32.mrf.mxu1  ;;  %v1040_v55 = vpop.f32.mrf.mxu0 }
  0xe1   : > { %v586_v30 = vadd.f32 %v567_v23, %v457_v26  ;;  %v987_v49 = vmul.f32 -1.442695, %v587_v25  ;;  %v482_v57 = vadd.f32 %v1040_v55, %v370_v54 }
  0xe2   : > { %v1050_v28 = vpop.f32.mrf.mxu1  ;;  %v476_v58 = vpop.f32.mrf.mxu0 }
  0xe3   : > { %v601_v33 = vadd.f32 %v1050_v28, %v472_v31  ;;  %v986_v50 = vmul.f32 -1.442695, %v586_v30  ;;  %v477_v61 = vadd.f32 %v476_v58, %v369_v59 }
  0xe4   : > { %v577_v35 = vpop.f32.mrf.mxu1 }
  0xe5   : > { %v989_v36 = vmul.f32 -1.442695, %v601_v33  ;;  %v600_v37 = vadd.f32 %v577_v35, %v467_v34 }
  0xe7   : > { %1080 = vpow2.f32 %v989_v36  ;;  %v988_v38 = vmul.f32 -1.442695, %v600_v37 }
  0xe9   : > { %1082 = vpow2.f32 %v988_v38 }
  0xf4   : > { %v1081_v39 = vpop.eup %1080 }
  0xf5   : > { %v609_v40 = vadd.f32 1.0, %v1081_v39 }
  0xf6   : > { %v1083_v41 = vpop.eup %1082 }
  0xf7   : > { %1084 = vrcp.f32 %v609_v40  ;;  %v608_v42 = vadd.f32 1.0, %v1083_v41 }
  0xf9   : > { %1086 = vrcp.f32 %v608_v42 }
  0xfa   : > { %1088 = vpow2.f32 %v987_v49 }
  0xfb   : > { %1090 = vpow2.f32 %v986_v50 }
 0x104   : > { %v1085_v43 = vpop.eup %1084 }
 0x105   : > { %v617_v44 = vmul.f32 %v1085_v43, %v1185_v3 }
 0x106   : > { %v1087_v45 = vpop.eup %1086 }
 0x107   : > { %1051 = vmatprep.subr.mxu1 %v617_v44  ;;  %v616_v46 = vmul.f32 %v1087_v45, %v1188_v5  ;;  %v1089_v51 = vpop.eup %1088 }
 0x108   : > { %1052 = vmatpush3.msra.mxu1 %v617_v44  ;;  %v1091_v52 = vpop.eup %1090  ;;  %v595_v53 = vadd.f32 1.0, %v1089_v51 }
 0x109   : > { %1053 = vmatprep.subr.mxu1 %v616_v46  ;;  %v594_v56 = vadd.f32 1.0, %v1091_v52 }
 0x10a   : > { %1054 = vmatpush3.msra.mxu1 %v616_v46  ;;  %1092 = vrcp.f32 %v595_v53 }
 0x10b   : > { %1056 = vmatmul.mubr.msk.f32.vlgmr.msra.gmra.mxu1 %vm371_vm1, %v615_v47  ;;  %1094 = vrcp.f32 %v594_v56 }
 0x117   : > { %v1093_v1 = vpop.eup %1092 }
 0x118   : > { %v1095_v2 = vpop.eup %1094  ;;  %v704_v4 = vsub.f32 1.0, %v1093_v1 }
 0x119   : > { %v703_v6 = vsub.f32 1.0, %v1095_v2 }
 0x11a   : > { %v706_v8 = vmul.f32 %v704_v4, %v1185_v3  ;;  %v796_v3 = vld [vmem:[%s1167_s14] sm:$0xff] }
 0x11b   : > { %v705_v12 = vmul.f32 %v703_v6, %v1188_v5  ;;  %1069 = vmatprep.mubr.msk.f32.mxu1 %vm371_vm1, %v796_v3 }
 0x1cb   : > { %v1057_v60 = vpop.f32.mrf.mxu1 }
 0x1cc   : > { %v700_v62 = vadd.f32 %v1057_v60, %v482_v57 }
 0x1cd   : > { %v690_v63 = vpop.f32.mrf.mxu1 }
 0x1ce   : > { %1096 = vtanh.f32 %v700_v62  ;;  %v699_v0 = vadd.f32 %v690_v63, %v477_v61 }
 0x1d0   : > { %1098 = vtanh.f32 %v699_v0 }
 0x1db   : > { %v1097_v7 = vpop.eup %1096 }
 0x1dc   : > { %v708_v9 = vmul.f32 %v1097_v7, %v1093_v1 }
 0x1dd   : > { %v1099_v10 = vpop.eup %1098 }
 0x1de   : > { %v710_v11 = vadd.f32 %v708_v9, %v706_v8  ;;  %v707_v13 = vmul.f32 %v1099_v10, %v1095_v2 }
 0x1e0   : > { %712 = vst.msk [vmem:[#allocation2 + $0x8] sm:$0xff] %vm371_vm1, %v710_v11  ;;  %1058 = vmatprep.subr.mxu0 %v710_v11  ;;  %v709_v14 = vadd.f32 %v707_v13, %v705_v12 }
 0x1e1   : > { %1059 = vmatpush3.msra.mxu0 %v710_v11 }
 0x1e2   : > { %711 = vst.msk [vmem:[#allocation2] sm:$0xff] %vm371_vm1, %v709_v14  ;;  %1060 = vmatprep.subr.mxu0 %v709_v14 }
 0x1e3   : > { %1061 = vmatpush3.msra.mxu0 %v709_v14 }
 0x1e4   : > { %1063 = vmatmul.mubr.msk.f32.vlgmr.msra.gmra.mxu0 %vm371_vm1, %v714_v15 }
 0x2a4   : > { %v1064_v5 = vpop.f32.mrf.mxu0 }
 0x2a5   : > { %1065 = vmatprep.subr.mxu1 %v1064_v5 }
 0x2a6   : > { %v787_v16 = vpop.f32.mrf.mxu0  ;;  %1066 = vmatpush3.msra.mxu1 %v1064_v5 }
 0x2a7   : > { %1067 = vmatprep.subr.mxu1 %v787_v16 }
 0x2a8   : > { %1068 = vmatpush3.msra.mxu1 %v787_v16 }
 0x2a9   : > { %1070 = vmatmul.mubr.msk.f32.vlgmr.msra.gmra.mxu1 %vm371_vm1, %v797_v17 }
 0x369   : > { %v1071_v18 = vpop.f32.mrf.mxu1 }
 0x36a   : > { %v880_v19 = vmax.f32 %v1071_v18, 0.0 }
 0x36b   : > { %v870_v20 = vpop.f32.mrf.mxu1 }
 0x36c   : > { %882 = vst.msk [vmem:[%s1177_s20 + $0x8] sm:$0xff] %vm371_vm1, %v880_v19  ;;  %v879_v21 = vmax.f32 %v870_v20, 0.0 }
 0x36e   : > { %881 = vst.msk [vmem:[%s1177_s20] sm:$0xff] %vm371_vm1, %v879_v21 }
 0x36f PF: > { %s18_s27 = sadd.s32 1, %s1106_s27  }
 0x370   : > { %p15_p5 = scmp.ge.s32.totalorder %s18_s27, 5  }
 0x372   :  { %17 = sbr.rel (!%p15_p5) target bundleno = 1 (0x1), region = 92 }

</bundles_post_ra>
